<compile_context>
chip_gen: v7x
topology: tpu7x:2x2x1
jax: 0.10.0
libtpu: 0.0.40
codegen_flags: <defaults>
</compile_context>

<pallas_src>
import jax
import jax.numpy as jnp
from jax.experimental import pallas as pl
from jax.experimental.pallas import tpu as pltpu


def _dma_identity_kernel(x_hbm_ref, o_hbm_ref, sem):
    # One DMA descriptor moving the whole array HBM -> HBM.  No grid, no VMEM
    # staging, no vector load/store slots -- only the DMA engine is busy.
    copy = pltpu.make_async_copy(x_hbm_ref, o_hbm_ref, sem)
    copy.start()
    copy.wait()


@jax.jit
def _identity_copy_jit(x):
    nbytes = x.size * x.dtype.itemsize
    return pl.pallas_call(
        _dma_identity_kernel,
        out_shape=jax.ShapeDtypeStruct(x.shape, x.dtype),
        in_specs=[pl.BlockSpec(memory_space=pl.ANY)],   # raw HBM ref, no auto-DMA
        out_specs=pl.BlockSpec(memory_space=pl.ANY),    # raw HBM ref, written via DMA
        scratch_shapes=[pltpu.SemaphoreType.DMA],
        cost_estimate=pl.CostEstimate(
            flops=0, transcendentals=0, bytes_accessed=2 * nbytes),
    )(x)


def identity_copy_pallas(x: jax.Array, *, min_bytes: int = 1 << 20) -> jax.Array:
    """Bit-exact identity implemented as a single HBM->HBM DMA Pallas kernel.

    Inputs smaller than `min_bytes` (default 1 MiB) skip the kernel entirely:
    for an identity op a pass-through is always at least as fast, and tiny
    latents would otherwise pay fixed kernel-launch overhead.
    """
    if x.size == 0 or x.ndim == 0:
        return x
    if x.size * x.dtype.itemsize < min_bytes:
        return x
    return _identity_copy_jit(x)


class IdentityFirstStage:
    """JAX/Pallas port of ldm.models.autoencoder.IdentityFirstStage.

    Default path is a zero-cost pass-through (the performance-optimal choice
    for an identity op).  Set `use_pallas_copy=True` to route tensors through
    the HBM->HBM DMA Pallas kernel instead; `pallas_min_bytes` controls the
    small-input bypass on that path.
    """

    def __init__(self, *args, vq_interface: bool = False,
                 use_pallas_copy: bool = False,
                 pallas_min_bytes: int = 1 << 20, **kwargs):
        self.vq_interface = vq_interface
        self.use_pallas_copy = use_pallas_copy
        self.pallas_min_bytes = pallas_min_bytes  # no parameters to initialize

    def _identity(self, x):
        if self.use_pallas_copy:
            return identity_copy_pallas(x, min_bytes=self.pallas_min_bytes)
        return x  # zero HBM traffic: identity is pure metadata

    def encode(self, x, *args, **kwargs):
        return self._identity(x)

    def decode(self, x, *args, **kwargs):
        return self._identity(x)

    def quantize(self, x, *args, **kwargs):
        if self.vq_interface:
            return (self._identity(x), None, [None, None, None])
        return self._identity(x)

    def forward(self, x, *args, **kwargs):
        return self._identity(x)

    __call__ = forward


if __name__ == "__main__":
    key = jax.random.PRNGKey(0)

    # NCHW latents: batch=2, channels=4, spatial=16x16.
    x = jax.random.normal(key, (2, 4, 16, 16), dtype=jnp.float32)

    # Module routed through the Pallas DMA kernel (min_bytes=0 forces the
    # kernel even for this small test tensor).
    model_kernel = IdentityFirstStage(vq_interface=True, use_pallas_copy=True,
                                      pallas_min_bytes=0)
    y = jax.block_until_ready(model_kernel(x))
    assert y.shape == x.shape, (y.shape, x.shape)
    assert y.dtype == x.dtype, (y.dtype, x.dtype)
    assert bool(jnp.all(y == x)), "identity forward mismatch (kernel path)"

    enc = jax.block_until_ready(model_kernel.encode(x))
    dec = jax.block_until_ready(model_kernel.decode(enc))
    q, _, extras = model_kernel.quantize(x)
    q = jax.block_until_ready(q)
    assert bool(jnp.all(dec == x)) and bool(jnp.all(q == x))
    assert extras == [None, None, None]

    # Odd, non-lane-aligned shape + bf16: the DMA copies it directly — no
    # pad / reshape / slice wrapper traffic, no (8,128) constraints to satisfy.
    x_odd = jax.random.normal(jax.random.PRNGKey(1), (3, 5, 17, 17),
                              dtype=jnp.bfloat16)
    y_odd = jax.block_until_ready(identity_copy_pallas(x_odd, min_bytes=0))
    assert y_odd.shape == x_odd.shape and y_odd.dtype == x_odd.dtype
    assert bool(jnp.all(y_odd == x_odd))

    # Default production path: zero-cost pass-through, no kernel launch.
    model_fast = IdentityFirstStage(vq_interface=False)
    z = model_fast(x)
    assert z is x

    # Small-input bypass on the Pallas path (8 KiB latent < 1 MiB threshold).
    model_bypass = IdentityFirstStage(use_pallas_copy=True)
    zb = model_bypass(x)
    assert zb is x

    print("KERNEL_OK")
</pallas_src>

<mosaic_0001>
module attributes {stable_mosaic.version = 11 : i64} {
  func.func @_dma_identity_kernel(%arg0: memref<2x4x16x16xf32, #tpu.memory_space<any>>, %arg1: memref<2x4x16x16xf32, #tpu.memory_space<any>>, %arg2: memref<!tpu.dma_semaphore, #tpu.memory_space<semaphore_mem>>) attributes {dimension_semantics = [], scalar_prefetch = 0 : i64, scratch_operands = 1 : i64, tpu.core_type = #tpu.core_type<tc>} {
    tpu.enqueue_dma source(%arg0 : memref<2x4x16x16xf32, #tpu.memory_space<any>>) target(%arg1 : memref<2x4x16x16xf32, #tpu.memory_space<any>>) target_semaphore(%arg2 : memref<!tpu.dma_semaphore, #tpu.memory_space<semaphore_mem>>)
    tpu.wait_dma2 semaphore(%arg2 : memref<!tpu.dma_semaphore, #tpu.memory_space<semaphore_mem>>) src(%arg0 : memref<2x4x16x16xf32, #tpu.memory_space<any>>) dst(%arg1 : memref<2x4x16x16xf32, #tpu.memory_space<any>>)
    return
  }
}

</mosaic_0001>

<bundles_post_ra>
// kernel: _identity_copy_jit.1
= control target key start
LH: loop header
LB: loop body
LE: loop exit
PB: predicated region body
PF: predicated region fallthrough
CT: control target
= control target key end

     0   :  { %s36_s6 = smov [#allocation2]   ;;  %s37_s7 = smov [#allocation3]   ;;  %s55_s0 = inlined_call_operand.hbm [shape: f32[2,4,16,16], index: 0, kind: input, shape index: {}]   ;;  %s56_s1 = inlined_call_operand.hbm [shape: f32[2,4,16,16], index: 1, kind: output, shape index: {}]  }
   0x1   :  { %s38_s8 = smov 0  }
   0x2   :  { %18 = dma.general %s55_s0, 2048, %s56_s1, %s36_s6, %s37_s7, [#allocation4], %s38_s8, 0  }
   0x3   :  { %34 = dma.done.wait [#allocation2], 2048 }
   0x4   :  { %35 = vsyncadd [#allocation2], 4294965248 }
   0x5   :  { %24 = vsyncmov [#allocation2] }
   0x8   :  { %s25_s13 = vpop.sfrf %24 }
   0x9   :  { %p30_p0 = scmp.ne.s32.totalorder %s25_s13, 0 }
   0xb   :  { %29 = shalt.err (%p30_p0)  }

</bundles_post_ra>
